<compile_context>
chip_gen: v5e
topology: v5e:2x2
jax: 0.10.0
libtpu: 0.0.40
codegen_flags: <defaults>
</compile_context>

<pallas_src>
import functools

import jax
import jax.numpy as jnp
from jax.experimental import pallas as pl
from jax.experimental.pallas import tpu as pltpu


_TK_CAP = 2048   # max K-tile in elements


def _round_up(v, m):
    return ((v + m - 1) // m) * m


def _round_down(v, m):
    return max(m, (v // m) * m)


def _vmem_budget_and_limit():
    """Generation-aware VMEM sizing.  ~96/112 MiB on 128-MiB parts (v5e/v6e),
    ~40/56 MiB on v7x (64 MiB physical).  Conservative default when no TPU is
    attached (e.g. interpret mode on CPU)."""
    cap = 64 * 1024 * 1024
    try:
        if pltpu.is_tpu_device():
            info = pltpu.get_tpu_info()
            cap = int(getattr(info, "vmem_capacity_bytes", cap))
    except Exception:
        pass
    budget = max(8 * 1024 * 1024, min(int(cap * 0.75), cap - 24 * 1024 * 1024))
    limit = max(budget, int(cap * 0.875))
    return budget, limit


def _num_tensorcores():
    """2 on v7x (megacore), else 1.  Only used to decide whether a single-block
    problem should be split so both TensorCores get work."""
    try:
        d = jax.devices()[0]
        if d.platform == "tpu" and "v7" in str(getattr(d, "device_kind", "")).lower():
            return 2
    except Exception:
        pass
    return 1


def _pick_tiles(B, N, K, x_item, w_item, out_item, out_is_f32, budget, num_cores):
    """MXU-aligned tiles that FILL the VMEM budget (shrink-then-grow)."""

    def kt(tk_):
        return -(-K // tk_)

    def est(tm_, tn_, tk_):
        b = 2 * (tm_ * tk_ * x_item + tk_ * tn_ * w_item + tn_ * out_item)  # dbl-buffered x, w, bias
        b += 2 * tm_ * tn_ * out_item                                       # dbl-buffered output
        if (not out_is_f32) and kt(tk_) > 1:
            b += tm_ * tn_ * 4                                              # f32 accumulator scratch
        return b

    # --- K axis: single step (tk = K) or a 128-aligned divisor of K, so no
    #     tail masking is ever needed; otherwise the wrapper pads K once.
    if K <= _TK_CAP:
        tk = K
    else:
        tk = 0
        for cand in (2048, 1792, 1536, 1280, 1024, 896, 768, 640, 512, 384, 256, 128):
            if K % cand == 0:
                tk = cand
                break
        if tk == 0:
            tk = 512   # wrapper zero-pads K to a multiple of this

    tm = B if B <= 128 else 128
    tn = N if N <= 128 else 128

    # --- shrink tk if even minimal M/N tiles overflow the budget
    while est(tm, tn, tk) > budget and tk > 128:
        new_tk = _round_down(tk // 2, 128)
        if new_tk == tk:
            break
        tk = new_tk

    # --- grow phase: fill the budget.  Priority: tm (weight-tile reuse), then
    #     tn (x-tile reuse) -- both cut HBM re-reads -- then tk (fewer steps).
    def next_size(cur, full, align):
        if cur >= full:
            return None
        nxt = min(full, cur * 2)
        if nxt != full:
            nxt = _round_down(nxt, align)
        return nxt if nxt > cur else None

    progress = True
    while progress:
        progress = False
        nxt = next_size(tm, B, 8)
        if nxt is not None and est(nxt, tn, tk) <= budget:
            tm, progress = nxt, True
        nxt = next_size(tn, N, 128)
        if nxt is not None and est(tm, nxt, tk) <= budget:
            tn, progress = nxt, True
        if tk < K:
            nxt = next_size(tk, min(K, _TK_CAP), 128)
            if (nxt is not None and (nxt == K or K % nxt == 0)
                    and est(tm, tn, nxt) <= budget):
                tk, progress = nxt, True

    # --- only on 2-TensorCore chips (v7x): give both cores work when the
    #     problem would otherwise be a single block on the parallel axes.
    if num_cores >= 2 and (-(-B // tm)) * (-(-N // tn)) < 2:
        if N >= 256:
            tn = _round_up(-(-N // 2), 128)
        elif B >= 16:
            tm = _round_up(-(-B // 2), 8)

    return tm, tn, tk


def _sparsechem_kernel(seed_ref, x_ref, w_ref, b_ref, o_ref, *scratch,
                       non_linearity, dropout_p, training, num_k_steps):
    use_dropout = training and dropout_p > 0.0

    tile_seed = None
    if use_dropout:
        # Per-(i, j)-tile seed, computed at the TOP LEVEL of the kernel body
        # (program_id/num_programs inside a pl.when body do not lower in
        # interpret mode).  Multiplicative mix reduces cross-seed collisions.
        # TODO(synk): PyTorch's dropout RNG stream cannot be reproduced
        # bit-exactly; only the Bernoulli(1-p) + 1/(1-p)-scale semantics are
        # matched, and the mask depends on the tiling configuration.
        tile_seed = (seed_ref[0] * jnp.int32(1000003)
                     + pl.program_id(0) * pl.num_programs(1) + pl.program_id(1))

    def epilogue(acc_f32):
        out = acc_f32 + b_ref[...].astype(jnp.float32)
        out = non_linearity(out)
        if use_dropout:
            pltpu.prng_seed(tile_seed)
            bits = pltpu.prng_random_bits(out.shape)
            if bits.dtype != jnp.int32:
                bits = pltpu.bitcast(bits, jnp.int32)
            bits = bits & jnp.int32(0x7FFFFFFF)                    # 31 uniform bits
            thresh = jnp.int32(min(int(round(dropout_p * (2.0 ** 31))), 2 ** 31 - 1))
            scale = jnp.float32(1.0 / (1.0 - dropout_p))
            out = jnp.where(bits >= thresh, out * scale, jnp.float32(0.0))
        o_ref[...] = out.astype(o_ref.dtype)

    # Plain NN matmul on the MXU (weight arrives as [K, N]); f32 accumulation.
    part = jnp.dot(x_ref[...], w_ref[...], preferred_element_type=jnp.float32)

    if num_k_steps == 1:
        epilogue(part)
        return

    acc_ref = scratch[0] if scratch else o_ref   # f32 outputs accumulate in place
    k = pl.program_id(2)

    @pl.when(k == 0)
    def _():
        acc_ref[...] = jnp.zeros_like(acc_ref)

    acc_ref[...] += part

    @pl.when(k == num_k_steps - 1)
    def _():
        epilogue(acc_ref[...].astype(jnp.float32))


def sparsechem_block(x, weight, bias=None, *,
                     non_linearity=lambda v: jnp.maximum(v, 0.0),
                     dropout_p=0.0, training=False, seed=0,
                     weight_is_transposed=False, compute_dtype=None,
                     tm=None, tn=None, tk=None):
    """Fused Linear(+bias) -> non_linearity -> Dropout.

    x:      [B, input_sz]
    weight: [output_sz, input_sz] (PyTorch nn.Linear layout), or with
            weight_is_transposed=True an already-transposed [input_sz, output_sz]
            (preferred: avoids the one-time relayout each call).
    bias:   [output_sz] or None.
    compute_dtype: optional narrow dtype (e.g. jnp.bfloat16); the cast happens
            *before* the pallas_call so HBM traffic / VMEM footprint shrink and
            v6e/v7x run the MXU at its bf16 rate.  Accumulation stays float32.
            Default None keeps exact f32 semantics of the reference module.
    """
    out_dtype = x.dtype
    B, K = x.shape
    if weight_is_transposed:
        K2, N = weight.shape
        w_t = weight
    else:
        N, K2 = weight.shape
        # One-time relayout to [K, N] so the MXU gets a plain NN matmul
        # (no per-tile RHS transpose).  Store weights transposed to amortize.
        w_t = weight.T
    assert K == K2, "weight shape does not match x"
    if bias is None:
        bias = jnp.zeros((N,), dtype=out_dtype)
    b2 = bias.reshape(1, N)

    # Cast operands BEFORE the pallas_call so the DMAs carry the narrow dtype.
    if compute_dtype is not None:
        cd = jnp.dtype(compute_dtype)
        if jnp.dtype(x.dtype) != cd:
            x = x.astype(cd)
        if jnp.dtype(w_t.dtype) != cd:
            w_t = w_t.astype(cd)

    budget, vmem_limit = _vmem_budget_and_limit()
    out_is_f32 = jnp.dtype(out_dtype) == jnp.dtype(jnp.float32)
    atm, atn, atk = _pick_tiles(
        B, N, K,
        jnp.dtype(x.dtype).itemsize, jnp.dtype(w_t.dtype).itemsize,
        jnp.dtype(out_dtype).itemsize, out_is_f32, budget, _num_tensorcores())
    tm = atm if tm is None else tm
    tn = atn if tn is None else tn
    tk = atk if tk is None else tk

    # Make the K grid exact: zero-pad once if tk does not divide K, so the
    # kernel never needs tail masking (padded x cols / w rows contribute 0).
    if K % tk != 0:
        K_pad = _round_up(K, tk)
        x = jnp.pad(x, ((0, 0), (0, K_pad - K)))
        w_t = jnp.pad(w_t, ((0, K_pad - K), (0, 0)))
        K = K_pad

    kt = pl.cdiv(K, tk)
    grid = (pl.cdiv(B, tm), pl.cdiv(N, tn), kt)
    use_scratch = (not out_is_f32) and kt > 1
    scratch_shapes = [pltpu.VMEM((tm, tn), jnp.float32)] if use_scratch else []

    kernel = functools.partial(
        _sparsechem_kernel,
        non_linearity=non_linearity,
        dropout_p=float(dropout_p),
        training=bool(training),
        num_k_steps=kt)

    cost = pl.CostEstimate(
        flops=2 * B * N * K,
        transcendentals=0,
        bytes_accessed=(x.size * jnp.dtype(x.dtype).itemsize
                        + w_t.size * jnp.dtype(w_t.dtype).itemsize
                        + b2.size * jnp.dtype(b2.dtype).itemsize
                        + B * N * jnp.dtype(out_dtype).itemsize))

    seed_arr = jnp.array([seed], dtype=jnp.int32)

    # Note: weight BlockSpec keeps default double-buffering; tiles already fill
    # the VMEM budget, so deeper pl.Buffered(3) would just trade VMEM away.
    return pl.pallas_call(
        kernel,
        out_shape=jax.ShapeDtypeStruct((B, N), out_dtype),
        grid_spec=pltpu.PrefetchScalarGridSpec(
            num_scalar_prefetch=1,
            grid=grid,
            in_specs=[
                pl.BlockSpec((tm, tk), lambda i, j, k, seed: (i, k)),   # x  [B, K]
                pl.BlockSpec((tk, tn), lambda i, j, k, seed: (k, j)),   # w  [K, N]
                pl.BlockSpec((1, tn), lambda i, j, k, seed: (0, j)),    # bias [1, N]
            ],
            out_specs=pl.BlockSpec((tm, tn), lambda i, j, k, seed: (i, j)),
            scratch_shapes=scratch_shapes,
        ),
        compiler_params=pltpu.CompilerParams(
            dimension_semantics=("parallel", "parallel", "arbitrary"),
            vmem_limit_bytes=vmem_limit),
        cost_estimate=cost,
    )(seed_arr, x, w_t, b2)


if __name__ == "__main__":
    key = jax.random.PRNGKey(0)
    k_x, k_w, k_b = jax.random.split(key, 3)

    # Small shapes consistent with the module: batch=8, input_sz=32, output_sz=32.
    batch, input_sz, output_sz = 8, 32, 32
    x = jax.random.normal(k_x, (batch, input_sz), dtype=jnp.float32)

    # Deterministic "nn.Linear"-style init.
    bound = 1.0 / (input_sz ** 0.5)
    weight = jax.random.uniform(k_w, (output_sz, input_sz), jnp.float32, -bound, bound)
    bias = jax.random.uniform(k_b, (output_sz,), jnp.float32, -bound, bound)

    relu = lambda v: jnp.maximum(v, 0.0)

    # Eval mode (dropout is identity), ReLU non-linearity.
    out = sparsechem_block(x, weight, bias, non_linearity=relu,
                           dropout_p=0.2, training=False, seed=0)
    out = jax.block_until_ready(out)

    ref = jnp.maximum(x @ weight.T + bias, 0.0)
    assert jnp.allclose(out, ref, atol=1e-5, rtol=1e-5)

    # Training-mode dropout uses the on-chip TPU PRNG; exercise it only when a
    # real TPU backend is present.
    if jax.default_backend() == "tpu":
        out_tr = jax.block_until_ready(
            sparsechem_block(x, weight, bias, non_linearity=relu,
                             dropout_p=0.2, training=True, seed=123))
        scale = 1.0 / (1.0 - 0.2)
        ok = jnp.all(jnp.isclose(out_tr, 0.0, atol=1e-6) |
                     jnp.isclose(out_tr, ref * scale, atol=1e-5, rtol=1e-5))
        assert bool(ok)

    print("KERNEL_OK")
</pallas_src>

<mosaic_0001>
module attributes {stable_mosaic.version = 11 : i64} {
  func.func @_sparsechem_kernel(%arg0: i32, %arg1: i32, %arg2: i32, %arg3: memref<1xi32, #tpu.memory_space<smem>>, %arg4: memref<8x32xf32, #tpu.memory_space<vmem>>, %arg5: memref<32x32xf32, #tpu.memory_space<vmem>>, %arg6: memref<1x32xf32, #tpu.memory_space<vmem>>, %arg7: memref<8x32xf32, #tpu.memory_space<vmem>>) attributes {dimension_semantics = [#tpu.dimension_semantics<parallel>, #tpu.dimension_semantics<parallel>, #tpu.dimension_semantics<arbitrary>], iteration_bounds = array<i64: 1, 1, 1>, scalar_prefetch = 1 : i64, scratch_operands = 0 : i64, tpu.core_type = #tpu.core_type<tc>, window_params = [{transform_indices = @transform_0, window_bounds = array<i64: 8, 32>}, {transform_indices = @transform_1, window_bounds = array<i64: 32, 32>}, {transform_indices = @transform_2, window_bounds = array<i64: 1, 32>}, {transform_indices = @transform_3, window_bounds = array<i64: 8, 32>}]} {
    %c0 = arith.constant 0 : index
    %c0_0 = arith.constant 0 : index
    %0 = vector.load %arg4[%c0, %c0_0] : memref<8x32xf32, #tpu.memory_space<vmem>>, vector<8x32xf32>
    %c0_1 = arith.constant 0 : index
    %c0_2 = arith.constant 0 : index
    %1 = vector.load %arg5[%c0_1, %c0_2] : memref<32x32xf32, #tpu.memory_space<vmem>>, vector<32x32xf32>
    %cst = arith.constant dense<0.000000e+00> : vector<8x32xf32>
    %2 = tpu.matmul %0, %1, %cst {dimension_numbers = #tpu.dot_dimension_numbers<[1], [0], [0], [1], [0, 0, 1, 1], [], []>} : vector<8x32xf32>, vector<32x32xf32>, vector<8x32xf32> -> vector<8x32xf32>
    %c0_3 = arith.constant 0 : index
    %c0_4 = arith.constant 0 : index
    %3 = vector.load %arg6[%c0_3, %c0_4] : memref<1x32xf32, #tpu.memory_space<vmem>>, vector<1x32xf32>
    %4 = vector.broadcast %3 : vector<1x32xf32> to vector<8x32xf32>
    %5 = arith.addf %2, %4 : vector<8x32xf32>
    %cst_5 = arith.constant 0.000000e+00 : f32
    %6 = vector.broadcast %cst_5 : f32 to vector<8x32xf32>
    %7 = arith.maximumf %5, %6 : vector<8x32xf32>
    %c0_6 = arith.constant 0 : index
    %c0_7 = arith.constant 0 : index
    %8 = vector.load %arg7[%c0_6, %c0_7] : memref<8x32xf32, #tpu.memory_space<vmem>>, vector<8x32xf32>
    tpu.vector_store %arg7[%c0_6, %c0_7], %7 {strides = array<i32>} : memref<8x32xf32, #tpu.memory_space<vmem>>, vector<8x32xf32>,
    return
  }
  func.func @transform_0(%arg0: i32, %arg1: i32, %arg2: i32, %arg3: memref<1xi32, #tpu.memory_space<smem>>) -> (i32, i32) {
    %c0_i32 = arith.constant 0 : i32
    return %arg0, %arg2 : i32, i32
  }
  func.func @transform_1(%arg0: i32, %arg1: i32, %arg2: i32, %arg3: memref<1xi32, #tpu.memory_space<smem>>) -> (i32, i32) {
    %c0_i32 = arith.constant 0 : i32
    return %arg2, %arg1 : i32, i32
  }
  func.func @transform_2(%arg0: i32, %arg1: i32, %arg2: i32, %arg3: memref<1xi32, #tpu.memory_space<smem>>) -> (i32, i32) {
    %c0_i32 = arith.constant 0 : i32
    %c0_i32_0 = arith.constant 0 : i32
    return %c0_i32, %arg1 : i32, i32
  }
  func.func @transform_3(%arg0: i32, %arg1: i32, %arg2: i32, %arg3: memref<1xi32, #tpu.memory_space<smem>>) -> (i32, i32) {
    %c0_i32 = arith.constant 0 : i32
    return %arg0, %arg1 : i32, i32
  }
}

</mosaic_0001>

<bundles_post_ra>
// kernel: tpu_custom_call.1
= control target key start
LH: loop header
LB: loop body
LE: loop exit
PB: predicated region body
PF: predicated region fallthrough
CT: control target
= control target key end

     0   :  { %10 = vsyncpa [#allocation5], 0  ;;  %s227_s0 = inlined_call_operand.<no memory space> [shape: s32[1], index: 0, kind: input, shape index: {}]   ;;  %s228_s1 = inlined_call_operand.hbm [shape: f32[8,32], index: 1, kind: input, shape index: {}]   ;;  %s229_s2 = inlined_call_operand.hbm [shape: f32[32,32], index: 2, kind: input, shape index: {}]   ;;  %s230_s3 = inlined_call_operand.vmem [shape: f32[1,32], index: 3, kind: input, shape index: {}]   ;;  %s231_s4 = inlined_call_operand.hbm [shape: f32[8,32], index: 4, kind: output, shape index: {}]  }
   0x1   :  { %11 = vsyncpa [#allocation8], 0 }
   0x2   :  { %12 = vsyncpa [#allocation6], 0  ;;  %s18_s17 = sshll.u32 %s228_s1, 4  ;;  %s185_s0 = smov [#allocation4]   ;;  %s19_s17 = int_to_ptr.hbm [resolvable:$true] %s18_s17 }
   0x3   :  { %s20_s18 = sshll.u32 %s185_s0, 4  ;;  %s28_s21 = sshll.u32 %s229_s2, 4  ;;  %s21_s18 = int_to_ptr.vmem [resolvable:$true] %s20_s18  ;;  %s29_s21 = int_to_ptr.hbm [resolvable:$true] %s28_s21 }
   0x4   :  { %23 = dma.hbm_to_vmem [thread:$0]  %s19_s17, 128, %s21_s18, [#allocation5]  }
   0x5   :  { %s186_s22 = smov [#allocation7]   ;;  %s187_s24 = smov 128  }
   0x6   :  { %s30_s23 = sshll.u32 %s186_s22, 4  ;;  %s188_s25 = smov 8   ;;  %s31_s23 = int_to_ptr.vmem [resolvable:$true] %s30_s23 }
   0x7   :  { %36 = dma.hbm_to_vmem [thread:$0]  %s29_s21, 512, %s31_s23, [#allocation8], %s187_s24, %s187_s24, %s188_s25  }
   0x8   :  { %179 = dma.done.wait [#allocation5], 128  }
   0x9   :  { %180 = vsyncadd [#allocation5], 4294967168 }
   0xa   :  { %181 = dma.done.wait [#allocation8], 512  }
   0xb   :  { %182 = vsyncadd [#allocation8], 4294966784  ;;  %v51_v0 = vld [vmem:[#allocation7 + $0x18] sm:$0xff]  ;;  %v50_v1 = vld [vmem:[#allocation7 + $0x10] sm:$0xff]  ;;  %vm56_vm0 = vcmask 261120   ;;  %s189_s26 = smov [#allocation9]  }
   0xc   :  { %72 = vmatpush.msra.mxu0 %v51_v0  ;;  %v49_v2 = vld [vmem:[#allocation7 + $0x8] sm:$0xff]  ;;  %v48_v3 = vld [vmem:[#allocation7] sm:$0xff]  ;;  %v47_v4 = vld [vmem:[#allocation4] sm:$0xff]  ;;  %s87_s27 = sshll.u32 %s189_s26, 4  ;;  %s89_s30 = sshll.u32 %s231_s4, 4  ;;  %s88_s27 = int_to_ptr.vmem [resolvable:$true] %s87_s27  ;;  %s90_s30 = int_to_ptr.hbm [resolvable:$true] %s89_s30 }
   0xd   :  { %v106_v5 = vld [vmem:[%s230_s3] ss:$0 sm:$0xff] }
   0xe   :  { %73 = vmatpush.msra.mxu0 %v50_v1 }
  0x10   :  { %74 = vmatpush.msra.mxu0 %v49_v2 }
  0x12   :  { %75 = vmatpush.msra.mxu0 %v48_v3 }
  0x13   :  { %100 = vmatmul.msk.f32.vlgmr.msra.gmra.mxu0 %vm56_vm0, %v47_v4 }
  0x90   :  { %v77_v6 = vpop.f32.mrf.mxu0 }
  0x91   :  { %v78_v7 = vadd.f32 %v106_v5, %v77_v6 }
  0x93   :  { %v80_v8 = vmax.f32 %v78_v7, 0.0 }
  0x95   :  { %81 = vst.msk [vmem:[#allocation9] sm:$0xff] %vm56_vm0, %v80_v8 }
  0x96   :  { %92 = dma.vmem_to_hbm [thread:$0]  %s88_s27, 128, %s90_s30, [#allocation6]  }
  0x97   :  { %183 = dma.done.wait [#allocation6], 128  }
  0x98   :  { %184 = vsyncadd [#allocation6], 4294967168 }
  0x99   :  { %97 = vsyncpa [#allocation5], 1 }
  0x9a   :  { %98 = vsyncpa [#allocation8], 1 }
  0x9b   :  { %99 = vsyncpa [#allocation6], 1 }

</bundles_post_ra>
